<compile_context>
chip_gen: v6e
topology: v6e:2x2x1
jax: 0.10.0
libtpu: 0.0.40
codegen_flags: <defaults>
</compile_context>

<pallas_src>
import functools

import jax
import jax.numpy as jnp
from jax import lax
from jax.experimental import pallas as pl
from jax.experimental.pallas import tpu as pltpu


def dam_kernel(pq_ref, mx_ref, pk_ref, pv_ref, vres_ref, gamma_ref,
               out_ref, acc_sc, *, exp_dtype):
    ki = pl.program_id(2)
    nk = pl.num_programs(2)

    @pl.when(ki == 0)
    def _init():
        acc_sc[...] = jnp.zeros_like(acc_sc)

    # Rank-1 energy tile via a VPU broadcast multiply, stabilized by the precomputed
    # exact row max; exp runs on the EUP (bf16 on v6e/v7x, f32 on v5e).
    arg = pq_ref[...] * pk_ref[...] - mx_ref[...]                    # (tq, tk) f32
    e = jnp.exp(arg.astype(exp_dtype))                               # (tq, tk)

    # Single MXU matmul accumulates both the unnormalized output (rows 0..C-1) and the
    # softmax normalizer Z (ones row of pv). NT-style contraction over the key tile.
    pv = pv_ref[...]                                                 # (C+1, tk)
    acc_sc[...] = acc_sc[...] + lax.dot_general(
        pv, e.astype(pv.dtype),
        dimension_numbers=(((1,), (1,)), ((), ())),
        preferred_element_type=jnp.float32)                          # (C+1, tq)

    @pl.when(ki == nk - 1)
    def _finalize():
        acc = acc_sc[...]
        c_out = acc.shape[0] - 1
        z = acc[c_out:c_out + 1, :]                                  # (1, tq)
        inv = pl.reciprocal(z, approx=True)
        inv = inv * (2.0 - z * inv)                                  # one Newton step, O(tq)
        out = acc[:c_out, :] * inv                                   # (C, tq)
        res = vres_ref[...].astype(jnp.float32)
        out_ref[...] = (gamma_ref[0] * out + res).astype(out_ref.dtype)


def _pick_tile(n_pad, cap):
    # Multiple of 128 that divides n_pad (n_pad is itself a multiple of 128).
    t = max(128, (min(cap, n_pad) // 128) * 128)
    while n_pad % t:
        t -= 128
    return t


def _device_kind():
    try:
        return jax.devices()[0].device_kind.lower()
    except Exception:
        return ""


def _auto_dtypes(c):
    """(MXU feed dtype, exp compute dtype) defaults per TPU generation."""
    kind = _device_kind()
    if ("v6" in kind) or ("v7" in kind) or ("7x" in kind):
        return jnp.bfloat16, jnp.bfloat16       # bf16 EUP: exp in bf16
    if "v5" in kind:
        # No bf16 EUP/VPU: keep exp f32; bf16 MXU feed only pays off for larger C.
        return (jnp.bfloat16 if c >= 64 else jnp.float32), jnp.float32
    return jnp.bfloat16, jnp.float32


def _vmem_limit_bytes():
    kind = _device_kind()
    if ("v7" in kind) or ("7x" in kind):
        return 48 * 1024 * 1024                 # 64 MiB physical per TC on v7x
    if "v6" in kind:
        return 64 * 1024 * 1024
    return 48 * 1024 * 1024


def dam_module_forward(q, k, v, params, *, e_dtype=None, exp_dtype=None,
                       block_q=1024, block_k=1024):
    B, C, L, H, W = q.shape
    N = L * H * W
    out_dtype = q.dtype
    f32 = jnp.float32

    auto_e, auto_exp = _auto_dtypes(C)
    if e_dtype is None:
        e_dtype = auto_e
    if exp_dtype is None:
        exp_dtype = auto_exp
    e_dtype = jnp.dtype(e_dtype)
    exp_dtype = jnp.dtype(exp_dtype)
    if e_dtype == jnp.dtype(jnp.float32):
        exp_dtype = jnp.dtype(jnp.float32)      # exact path: keep exp in f32 too

    q2f = q.reshape(B, C, N).astype(f32)
    k2f = k.reshape(B, C, N).astype(f32)
    v2f = v.reshape(B, C, N).astype(f32)
    v_res = v.reshape(B, C, N)                  # residual streamed in native dtype

    wq = params["wq"].astype(f32).reshape(C)
    wk = params["wk"].astype(f32).reshape(C)
    bq = params["bq"].astype(f32).reshape(())
    bk = params["bk"].astype(f32).reshape(())
    wv = params["wv"].astype(f32)               # (C, 3C), input order [v | q | k]
    bv = params["bv"].astype(f32).reshape(C, 1)
    gamma = params["gamma_x"].astype(f32).reshape(1)

    # ---- Hoisted 1x1-conv projections (done once here, not per key tile in-kernel) ----
    pq = jnp.einsum("c,bcn->bn", wq, q2f) + bq                       # (B, N)
    pk = jnp.einsum("c,bcn->bn", wk, k2f) + bk                       # (B, N)
    pk_max = pk.max(axis=1, keepdims=True)                           # (B, 1)
    pk_min = pk.min(axis=1, keepdims=True)                           # (B, 1)
    # Rank-1 energy => exact closed-form per-row max (no online-softmax rescaling).
    mx = jnp.where(pq >= 0.0, pq * pk_max, pq * pk_min)              # (B, N)

    # Hoisted value projection over cat(v, q, k) with an appended "ones" row so the
    # single in-kernel matmul also accumulates the softmax normalizer Z.
    pv = (jnp.einsum("cd,bdn->bcn", wv[:, 0:C], v2f)
          + jnp.einsum("cd,bdn->bcn", wv[:, C:2 * C], q2f)
          + jnp.einsum("cd,bdn->bcn", wv[:, 2 * C:3 * C], k2f)
          + bv[None, :, :])                                          # (B, C, N)
    pv = jnp.concatenate([pv, jnp.ones((B, 1, N), f32)], axis=1)     # (B, C+1, N)

    # ---- Padding: no in-kernel mask needed ----
    n_pad = ((N + 127) // 128) * 128
    if n_pad != N:
        pad_n = n_pad - N
        # Padded key columns: pk <- pk_min so pq*pk - mx <= 0 (exp finite, <= 1) for
        # every query row, and pv columns (including the ones row) <- 0 so they
        # contribute exactly nothing to the output or to Z.
        pk = jnp.concatenate([pk, jnp.broadcast_to(pk_min, (B, pad_n))], axis=1)
        pv = jnp.pad(pv, ((0, 0), (0, 0), (0, pad_n)))
        # Padded query rows are sliced off at the end; zero padding keeps them finite.
        pq = jnp.pad(pq, ((0, 0), (0, pad_n)))
        mx = jnp.pad(mx, ((0, 0), (0, pad_n)))
        v_res = jnp.pad(v_res, ((0, 0), (0, 0), (0, pad_n)))

    pq_col = pq.reshape(B, n_pad, 1)
    mx_col = mx.reshape(B, n_pad, 1)
    pk_row = pk.reshape(B, 1, n_pad)
    pv = pv.astype(e_dtype)

    cap_q = block_q
    if B == 1 and n_pad >= 256:
        cap_q = min(cap_q, n_pad // 2)   # keep >= 2 parallel query tiles for dual-TC chips
    tq = _pick_tile(n_pad, cap_q)
    tk = _pick_tile(n_pad, block_k)
    grid = (B, n_pad // tq, n_pad // tk)

    kernel = functools.partial(dam_kernel, exp_dtype=exp_dtype)

    grid_spec = pltpu.PrefetchScalarGridSpec(
        num_scalar_prefetch=0,
        grid=grid,
        in_specs=[
            pl.BlockSpec((None, tq, 1), lambda b, qi, ki: (b, qi, 0)),      # pq column
            pl.BlockSpec((None, tq, 1), lambda b, qi, ki: (b, qi, 0)),      # row-max column
            pl.BlockSpec((None, 1, tk), lambda b, qi, ki: (b, 0, ki)),      # pk row (key tile)
            pl.BlockSpec((None, C + 1, tk), lambda b, qi, ki: (b, 0, ki)),  # pv tile [value ; ones]
            pl.BlockSpec((None, C, tq), lambda b, qi, ki: (b, 0, qi)),      # v residual (query tile)
            pl.BlockSpec(memory_space=pltpu.MemorySpace.SMEM),              # gamma_x
        ],
        out_specs=pl.BlockSpec((None, C, tq), lambda b, qi, ki: (b, 0, qi)),
        scratch_shapes=[
            pltpu.VMEM((C + 1, tq), jnp.float32),    # [unnormalized out ; Z] accumulator
        ],
    )

    n_q_tiles = n_pad // tq
    e_size = jnp.dtype(e_dtype).itemsize
    in_size = jnp.dtype(v_res.dtype).itemsize
    out_size = jnp.dtype(out_dtype).itemsize
    cost = pl.CostEstimate(
        flops=int(2 * B * (C + 1) * n_pad * n_pad),
        transcendentals=int(B * n_pad * n_pad),
        bytes_accessed=int(
            B * n_q_tiles * n_pad * (4 + (C + 1) * e_size)     # pk + pv re-streamed per q tile
            + B * n_pad * (8 + C * in_size + C * out_size)),   # pq, mx, residual, output
    )

    out = pl.pallas_call(
        kernel,
        out_shape=jax.ShapeDtypeStruct((B, C, n_pad), out_dtype),
        grid_spec=grid_spec,
        compiler_params=pltpu.CompilerParams(
            dimension_semantics=("parallel", "parallel", "arbitrary"),
            vmem_limit_bytes=_vmem_limit_bytes()),
        cost_estimate=cost,
    )(pq_col, mx_col, pk_row, pv, v_res, gamma)

    return out[:, :, :N].reshape(B, C, L, H, W)


def dam_reference(q, k, v, params):
    """Pure-JAX reference mirroring the PyTorch forward."""
    B, C, L, H, W = q.shape
    N = L * H * W
    q2 = q.reshape(B, C, N).astype(jnp.float32)
    k2 = k.reshape(B, C, N).astype(jnp.float32)
    v2 = v.reshape(B, C, N).astype(jnp.float32)
    pq = jnp.einsum("c,bcn->bn", params["wq"][0], q2) + params["bq"][0]   # (B, N)
    pk = jnp.einsum("c,bcn->bn", params["wk"][0], k2) + params["bk"][0]   # (B, N)
    energy = pq[:, :, None] * pk[:, None, :]                              # (B, N, N)
    att = jax.nn.softmax(energy, axis=-1)
    cat = jnp.concatenate([v2, q2, k2], axis=1)                           # (B, 3C, N)
    pv = jnp.einsum("cd,bdn->bcn", params["wv"], cat) + params["bv"][None, :, :]
    out = jnp.einsum("bcm,bnm->bcn", pv, att)
    out = params["gamma_x"][0] * out + v2
    return out.reshape(B, C, L, H, W).astype(q.dtype)


if __name__ == "__main__":
    # Small shapes consistent with the module: B=2, C=4, (L,H,W)=(2,8,8) -> N=128.
    B, C, L, H, W = 2, 4, 2, 8, 8

    key = jax.random.PRNGKey(0)
    keys = jax.random.split(key, 12)

    q = jax.random.normal(keys[0], (B, C, L, H, W), jnp.float32)
    k = jax.random.normal(keys[1], (B, C, L, H, W), jnp.float32)
    v = jax.random.normal(keys[2], (B, C, L, H, W), jnp.float32)

    params = {
        "wq": jax.random.normal(keys[3], (1, C), jnp.float32) * 0.2,      # query_conv weight
        "bq": jax.random.normal(keys[4], (1,), jnp.float32) * 0.1,        # query_conv bias
        "wk": jax.random.normal(keys[5], (1, C), jnp.float32) * 0.2,      # key_conv weight
        "bk": jax.random.normal(keys[6], (1,), jnp.float32) * 0.1,        # key_conv bias
        "wv": jax.random.normal(keys[7], (C, 3 * C), jnp.float32) * 0.2,  # value_conv weight
        "bv": jax.random.normal(keys[8], (C, 1), jnp.float32) * 0.1,      # value_conv bias
        # PyTorch initializes gamma_x to 0 (out == v exactly); use a nonzero value so
        # the attention path is actually exercised by the checks below.
        "gamma_x": jnp.array([0.5], jnp.float32),
    }

    ref = dam_reference(q, k, v, params)

    # Exact-math path: exp and the MXU matmul kept in f32.
    out_f32 = jax.block_until_ready(
        dam_module_forward(q, k, v, params, e_dtype=jnp.float32))
    assert out_f32.shape == (B, C, L, H, W)
    err_f32 = float(jnp.max(jnp.abs(out_f32 - ref)))
    assert jnp.allclose(out_f32, ref, rtol=2e-3, atol=2e-3), err_f32

    # Default (generation-tuned) path: bf16 MXU feed, bf16 exp on v6e/v7x, f32 on v5e.
    out_auto = jax.block_until_ready(dam_module_forward(q, k, v, params))
    err_auto = float(jnp.max(jnp.abs(out_auto - ref)))
    assert jnp.allclose(out_auto, ref, rtol=3e-2, atol=3e-2), err_auto

    # Ragged spatial size (N = 3*5*7 = 105 -> padded to 128) exercises the mask-free
    # padded-key handling (zeroed pv columns + pk_min padding).
    Lr, Hr, Wr = 3, 5, 7
    qr = jax.random.normal(keys[9], (1, C, Lr, Hr, Wr), jnp.float32)
    kr = jax.random.normal(keys[10], (1, C, Lr, Hr, Wr), jnp.float32)
    vr = jax.random.normal(keys[11], (1, C, Lr, Hr, Wr), jnp.float32)
    out_r = jax.block_until_ready(
        dam_module_forward(qr, kr, vr, params, e_dtype=jnp.float32))
    ref_r = dam_reference(qr, kr, vr, params)
    err_r = float(jnp.max(jnp.abs(out_r - ref_r)))
    assert jnp.allclose(out_r, ref_r, rtol=2e-3, atol=2e-3), err_r

    print("KERNEL_OK")
</pallas_src>

<mosaic_0001>
module attributes {stable_mosaic.version = 11 : i64} {
  func.func @dam_kernel(%arg0: i32, %arg1: i32, %arg2: i32, %arg3: memref<1x128x1xf32, #tpu.memory_space<vmem>>, %arg4: memref<1x128x1xf32, #tpu.memory_space<vmem>>, %arg5: memref<1x1x128xf32, #tpu.memory_space<vmem>>, %arg6: memref<1x5x128xf32, #tpu.memory_space<vmem>>, %arg7: memref<1x4x128xf32, #tpu.memory_space<vmem>>, %arg8: memref<1xf32, #tpu.memory_space<smem>>, %arg9: memref<1x4x128xf32, #tpu.memory_space<vmem>>, %arg10: memref<5x128xf32, #tpu.memory_space<vmem>>) attributes {dimension_semantics = [#tpu.dimension_semantics<parallel>, #tpu.dimension_semantics<parallel>, #tpu.dimension_semantics<arbitrary>], iteration_bounds = array<i64: 2, 1, 1>, scalar_prefetch = 0 : i64, scratch_operands = 1 : i64, tpu.core_type = #tpu.core_type<tc>, window_params = [{transform_indices = @transform_0, window_bounds = array<i64: 1, 128, 1>}, {transform_indices = @transform_1, window_bounds = array<i64: 1, 128, 1>}, {transform_indices = @transform_2, window_bounds = array<i64: 1, 1, 128>}, {transform_indices = @transform_3, window_bounds = array<i64: 1, 5, 128>}, {transform_indices = @transform_4, window_bounds = array<i64: 1, 4, 128>}, {transform_indices = @transform_5, window_bounds = array<i64: 1>}, {transform_indices = @transform_6, window_bounds = array<i64: 1, 4, 128>}]} {
    %c0_i32 = arith.constant 0 : i32
    %0 = arith.cmpi eq, %arg2, %c0_i32 : i32
    %1 = arith.extui %0 : i1 to i32
    %c0_i32_0 = arith.constant 0 : i32
    %2 = arith.cmpi ne, %1, %c0_i32_0 : i32
    scf.if %2 {
      %cst_18 = arith.constant 0.000000e+00 : f32
      %24 = vector.broadcast %cst_18 : f32 to vector<5x128xf32>
      %c0_19 = arith.constant 0 : index
      %c0_20 = arith.constant 0 : index
      %25 = vector.load %arg10[%c0_19, %c0_20] : memref<5x128xf32, #tpu.memory_space<vmem>>, vector<5x128xf32>
      tpu.vector_store %arg10[%c0_19, %c0_20], %24 {strides = array<i32>} : memref<5x128xf32, #tpu.memory_space<vmem>>, vector<5x128xf32>,
    } else {
    }
    %c0 = arith.constant 0 : index
    %c0_1 = arith.constant 0 : index
    %c0_2 = arith.constant 0 : index
    %3 = vector.load %arg3[%c0, %c0_1, %c0_2] : memref<1x128x1xf32, #tpu.memory_space<vmem>>, vector<1x128x1xf32>
    %4 = vector.shape_cast %3 : vector<1x128x1xf32> to vector<128x1xf32>
    %c0_3 = arith.constant 0 : index
    %c0_4 = arith.constant 0 : index
    %c0_5 = arith.constant 0 : index
    %5 = vector.load %arg5[%c0_3, %c0_4, %c0_5] : memref<1x1x128xf32, #tpu.memory_space<vmem>>, vector<1x1x128xf32>
    %6 = vector.shape_cast %5 : vector<1x1x128xf32> to vector<1x128xf32>
    %7 = vector.broadcast %4 : vector<128x1xf32> to vector<128x128xf32>
    %8 = vector.broadcast %6 : vector<1x128xf32> to vector<128x128xf32>
    %9 = arith.mulf %7, %8 : vector<128x128xf32>
    %c0_6 = arith.constant 0 : index
    %c0_7 = arith.constant 0 : index
    %c0_8 = arith.constant 0 : index
    %10 = vector.load %arg4[%c0_6, %c0_7, %c0_8] : memref<1x128x1xf32, #tpu.memory_space<vmem>>, vector<1x128x1xf32>
    %11 = vector.shape_cast %10 : vector<1x128x1xf32> to vector<128x1xf32>
    %12 = vector.broadcast %11 : vector<128x1xf32> to vector<128x128xf32>
    %13 = arith.subf %9, %12 : vector<128x128xf32>
    %14 = math.exp %13 : vector<128x128xf32>
    %c0_9 = arith.constant 0 : index
    %c0_10 = arith.constant 0 : index
    %c0_11 = arith.constant 0 : index
    %15 = vector.load %arg6[%c0_9, %c0_10, %c0_11] : memref<1x5x128xf32, #tpu.memory_space<vmem>>, vector<1x5x128xf32>
    %16 = vector.shape_cast %15 : vector<1x5x128xf32> to vector<5x128xf32>
    %c0_12 = arith.constant 0 : index
    %c0_13 = arith.constant 0 : index
    %17 = vector.load %arg10[%c0_12, %c0_13] : memref<5x128xf32, #tpu.memory_space<vmem>>, vector<5x128xf32>
    %cst = arith.constant dense<0.000000e+00> : vector<5x128xf32>
    %18 = tpu.matmul %16, %14, %cst {dimension_numbers = #tpu.dot_dimension_numbers<[1], [1], [0], [0], [0, 0, 1, 0], [], []>} : vector<5x128xf32>, vector<128x128xf32>, vector<5x128xf32> -> vector<5x128xf32>
    %19 = arith.addf %17, %18 : vector<5x128xf32>
    %c0_14 = arith.constant 0 : index
    %c0_15 = arith.constant 0 : index
    %20 = vector.load %arg10[%c0_14, %c0_15] : memref<5x128xf32, #tpu.memory_space<vmem>>, vector<5x128xf32>
    tpu.vector_store %arg10[%c0_14, %c0_15], %19 {strides = array<i32>} : memref<5x128xf32, #tpu.memory_space<vmem>>, vector<5x128xf32>,
    %c0_i32_16 = arith.constant 0 : i32
    %21 = arith.cmpi eq, %arg2, %c0_i32_16 : i32
    %22 = arith.extui %21 : i1 to i32
    %c0_i32_17 = arith.constant 0 : i32
    %23 = arith.cmpi ne, %22, %c0_i32_17 : i32
    scf.if %23 {
      %c0_18 = arith.constant 0 : index
      %c0_19 = arith.constant 0 : index
      %24 = vector.load %arg10[%c0_18, %c0_19] : memref<5x128xf32, #tpu.memory_space<vmem>>, vector<5x128xf32>
      %25 = vector.extract_strided_slice %24 {offsets = [4, 0], sizes = [1, 128], strides = [1, 1]} : vector<5x128xf32> to vector<1x128xf32>
      %26 = tpu.reciprocal %25 {approx = true} : vector<1x128xf32> -> vector<1x128xf32>
      %27 = arith.mulf %25, %26 : vector<1x128xf32>
      %cst_20 = arith.constant 2.000000e+00 : f32
      %28 = vector.broadcast %cst_20 : f32 to vector<1x128xf32>
      %29 = arith.subf %28, %27 : vector<1x128xf32>
      %30 = arith.mulf %26, %29 : vector<1x128xf32>
      %31 = vector.extract_strided_slice %24 {offsets = [0, 0], sizes = [4, 128], strides = [1, 1]} : vector<5x128xf32> to vector<4x128xf32>
      %32 = vector.broadcast %30 : vector<1x128xf32> to vector<4x128xf32>
      %33 = arith.mulf %31, %32 : vector<4x128xf32>
      %c0_21 = arith.constant 0 : index
      %c0_22 = arith.constant 0 : index
      %c0_23 = arith.constant 0 : index
      %34 = vector.load %arg7[%c0_21, %c0_22, %c0_23] : memref<1x4x128xf32, #tpu.memory_space<vmem>>, vector<1x4x128xf32>
      %35 = vector.shape_cast %34 : vector<1x4x128xf32> to vector<4x128xf32>
      %c0_24 = arith.constant 0 : index
      %36 = memref.load %arg8[%c0_24] : memref<1xf32, #tpu.memory_space<smem>>
      %37 = vector.broadcast %36 : f32 to vector<4x128xf32>
      %38 = arith.mulf %37, %33 : vector<4x128xf32>
      %39 = arith.addf %38, %35 : vector<4x128xf32>
      %c0_25 = arith.constant 0 : index
      %c0_26 = arith.constant 0 : index
      %c0_27 = arith.constant 0 : index
      %40 = vector.load %arg9[%c0_25, %c0_26, %c0_27] : memref<1x4x128xf32, #tpu.memory_space<vmem>>, vector<1x4x128xf32>
      %41 = vector.shape_cast %40 : vector<1x4x128xf32> to vector<4x128xf32>
      %42 = vector.shape_cast %39 : vector<4x128xf32> to vector<1x4x128xf32>
      tpu.vector_store %arg9[%c0_25, %c0_26, %c0_27], %42 {strides = array<i32>} : memref<1x4x128xf32, #tpu.memory_space<vmem>>, vector<1x4x128xf32>,
    } else {
    }
    return
  }
  func.func @transform_0(%arg0: i32, %arg1: i32, %arg2: i32) -> (i32, i32, i32) {
    %c0_i32 = arith.constant 0 : i32
    %c0_i32_0 = arith.constant 0 : i32
    return %arg0, %arg1, %c0_i32 : i32, i32, i32
  }
  func.func @transform_1(%arg0: i32, %arg1: i32, %arg2: i32) -> (i32, i32, i32) {
    %c0_i32 = arith.constant 0 : i32
    %c0_i32_0 = arith.constant 0 : i32
    return %arg0, %arg1, %c0_i32 : i32, i32, i32
  }
  func.func @transform_2(%arg0: i32, %arg1: i32, %arg2: i32) -> (i32, i32, i32) {
    %c0_i32 = arith.constant 0 : i32
    %c0_i32_0 = arith.constant 0 : i32
    return %arg0, %c0_i32, %arg2 : i32, i32, i32
  }
  func.func @transform_3(%arg0: i32, %arg1: i32, %arg2: i32) -> (i32, i32, i32) {
    %c0_i32 = arith.constant 0 : i32
    %c0_i32_0 = arith.constant 0 : i32
    return %arg0, %c0_i32, %arg2 : i32, i32, i32
  }
  func.func @transform_4(%arg0: i32, %arg1: i32, %arg2: i32) -> (i32, i32, i32) {
    %c0_i32 = arith.constant 0 : i32
    %c0_i32_0 = arith.constant 0 : i32
    return %arg0, %c0_i32, %arg1 : i32, i32, i32
  }
  func.func @transform_5(%arg0: i32, %arg1: i32, %arg2: i32) -> i32 {
    %c0_i32 = arith.constant 0 : i32
    %c0_i32_0 = arith.constant 0 : i32
    return %c0_i32 : i32
  }
  func.func @transform_6(%arg0: i32, %arg1: i32, %arg2: i32) -> (i32, i32, i32) {
    %c0_i32 = arith.constant 0 : i32
    %c0_i32_0 = arith.constant 0 : i32
    return %arg0, %c0_i32, %arg1 : i32, i32, i32
  }
}

</mosaic_0001>

<bundles_post_ra>
// kernel: tpu_custom_call.1
= control target key start
LH: loop header
LB: loop body
LE: loop exit
PB: predicated region body
PF: predicated region fallthrough
CT: control target
= control target key end

     0   :  { %s1392_s0 = inlined_call_operand.vmem [shape: f32[2,128,1], index: 0, kind: input, shape index: {}]   ;;  %s1393_s1 = inlined_call_operand.vmem [shape: f32[2,128,1], index: 1, kind: input, shape index: {}]   ;;  %s1394_s2 = inlined_call_operand.vmem [shape: f32[2,1,128], index: 2, kind: input, shape index: {}]   ;;  %s1395_s3 = inlined_call_operand.vmem [shape: f32[2,5,128], index: 3, kind: input, shape index: {}]   ;;  %s1396_s4 = inlined_call_operand.vmem [shape: f32[2,4,128], index: 4, kind: input, shape index: {}]   ;;  %s1397_s5 = inlined_call_operand.<no memory space> [shape: f32[1], index: 5, kind: input, shape index: {}]   ;;  %s1398_s6 = inlined_call_operand.hbm [shape: f32[2,4,128], index: 6, kind: output, shape index: {}]  }
   0x1   :  { %11 = sst [smem:[#allocation3]] %s1397_s5 }
   0x2   :  { %12 = vsyncpa [#allocation5], 0 }
   0x3   :  { %14 = vsyncpa [#allocation5 + $0x1], 0  ;;  %s1203_s23 = smov 0   ;;  %s1205_s24 = smov 0  }
   0x4   :  { %s1207_s25 = smov 0   ;;  %s1209_s26 = smov 0  }
   0x5   :  { %s1211_s27 = smov 0   ;;  %s1213_s28 = smov 0  }
   0x6 LB: > { %s918_s5 = sadd.s32 4294967295, %s1159_s28   ;;  %s919_s29 = sadd.s32 4294967294, %s1159_s28   ;;  %s1159_s28 = sphi %s1213_s28, %s20_s28   ;;  %s1155_s27 = sphi %s1211_s27, %s1405_s27   ;;  %s1151_s26 = sphi %s1209_s26, %s1404_s26   ;;  %s1147_s25 = sphi %s1207_s25, %s1403_s25   ;;  %s1143_s24 = sphi %s1205_s24, %s1402_s24   ;;  %s1139_s23 = sphi %s1203_s23, %s1401_s23  }
   0x7   : > { %s39_s30 = sadd.s32 1, %s1155_s27  ;;  %s209_s7 = sadd.s32 1, %s1147_s25 }
   0x8   : > { %p41_p0 = scmp.ge.s32.totalorder %s39_s30, 2  ;;  %p219_p1 = scmp.ne.s32.totalorder %s1147_s25, %s1143_s24 }
   0x9   : > { %p220_p2 = scmp.eq.s32.totalorder %s918_s5, 1  ;;  %p225_p3 = scmp.ne.s32.totalorder %s1143_s24, %s1139_s23 }
   0xa   : > { %s1407_s30 = smov (%p41_p0, %s39_s30), 0  ;;  %p226_p5 = scmp.eq.s32.totalorder %s919_s29, 1 }
   0xb   : > { %p1243_p4 = por %p220_p2, %p219_p1  ;;  %s204_s9 = ssub.s32 %s1155_s27, %s1407_s30 }
   0xc   : > { %p922_p6 = scmp.ge.s32.totalorder %s1159_s28, 1  ;;  %p207_p7 = scmp.eq.s32.totalorder %s204_s9, 0 }
   0xd   : > { %p1250_p8 = por %p226_p5, %p225_p3  ;;  %p302_p9 = scmp.lt.s32.totalorder %s1159_s28, 3 }
   0xe   : > { %s1256_s11 = scalar_select %p207_p7, %s1147_s25, %s209_s7  }
   0xf   : > { %p303_p10 = pnand %p922_p6, %p302_p9 }
  0x10   : > { %p366_p11 = scmp.lt.s32.totalorder (!%p303_p10), %s1151_s26, 1  ;;  %s362_s14 = sand.u32 (!%p303_p10), 1, %s1143_s24  }
  0x11   : > { %306 = sbr.rel (%p303_p10) target bundleno = 480 (0x1e0), region = 44  ;;  %s923_s15 = sshll.u32 (!%p303_p10), %s362_s14, 2 }
  0x12   : > { %s932_s20 = sshll.u32 (!%p303_p10), %s1151_s26, 6  ;;  %s364_s21 = scalar_lea.vmem (!%p303_p10), [#allocation4], %s923_s15 }
  0x13   : > { %s779_s7 = scalar_lea.hbm (!%p303_p10), %s1398_s6, %s932_s20 }
  0x16   : > { %v1161_v0 = vmov 0   ;;  %s1260_s12 = scalar_select %p366_p11, %s1151_s26, 1  ;;  %v1162_v13 = vmov 0.0   ;;  %vm1163_vm0 = vmmov 0  }
  0x17   : > { %1048 = vset.pattern.permute.xlu1 %v1161_v0  ;;  %1047 = vset.pattern.permute.xlu0 %v1161_v0  ;;  %409 = vst [vmem:[#allocation2] sm:$0x1f] %v1162_v13 }
  0x18   : > { %s935_s13 = sshll.u32 %s1260_s12, 7  ;;  %954 = vmatprep.subr.mxu0 %v1162_v13  ;;  %986 = vmatprep.mubr.msk.f32.mxu0 %vm1163_vm0, %v1162_v13  ;;  %s390_s22 = scalar_lea.vmem %s1394_s2, %s1260_s12 }
  0x19   : > { %s1266_s16 = scalar_lea.vmem %s1392_s0, %s935_s13  ;;  %s1271_s19 = scalar_lea.vmem %s1393_s1, %s935_s13  ;;  %v1312_v34 = vld [vmem:[%s390_s22] ss:$0 sm:$0xff] }
  0x1a   : > { %v425_v1 = vld [vmem:[%s1266_s16 + $0x78] sm:$0xff]  ;;  %v424_v2 = vld [vmem:[%s1266_s16 + $0x70] sm:$0xff]  ;;  %v542_v5 = vld [vmem:[%s1271_s19 + $0x68] sm:$0xff]  ;;  %s928_s5 = sshll.u32 %s1260_s12, 3  ;;  %s761_s13 = sld [smem:[#allocation3]] }
  0x1b   : > { %504 = vperm.xlu0 %1047, %v425_v1   ;;  %499 = vperm.xlu1 %1048, %v424_v2   ;;  %v544_v3 = vld [vmem:[%s1271_s19 + $0x78] sm:$0xff]  ;;  %v543_v4 = vld [vmem:[%s1271_s19 + $0x70] sm:$0xff]  ;;  %v423_v6 = vld [vmem:[%s1266_s16 + $0x68] sm:$0xff]  ;;  %s397_s9 = scalar_lea.vmem %s1395_s3, %s928_s5  ;;  %s781_s22 = sshll.u32 %s364_s21, 4  ;;  %s782_s22 = int_to_ptr.vmem [resolvable:$true] %s781_s22 }
  0x1c   : > { %v541_v7 = vld [vmem:[%s1271_s19 + $0x60] sm:$0xff]  ;;  %v540_v9 = vld [vmem:[%s1271_s19 + $0x58] sm:$0xff]  ;;  %v539_v11 = vld [vmem:[%s1271_s19 + $0x50] sm:$0xff] }
  0x1d   : > { %v422_v8 = vld [vmem:[%s1266_s16 + $0x60] sm:$0xff]  ;;  %v421_v10 = vld [vmem:[%s1266_s16 + $0x58] sm:$0xff]  ;;  %v420_v12 = vld [vmem:[%s1266_s16 + $0x50] sm:$0xff] }
  0x1e   : > { %v538_v14 = vld [vmem:[%s1271_s19 + $0x48] sm:$0xff]  ;;  %v537_v16 = vld [vmem:[%s1271_s19 + $0x40] sm:$0xff]  ;;  %v536_v18 = vld [vmem:[%s1271_s19 + $0x38] sm:$0xff] }
  0x1f   : > { %622 = vperm.xlu0 %1047, %v544_v3   ;;  %617 = vperm.xlu1 %1048, %v543_v4   ;;  %v419_v15 = vld [vmem:[%s1266_s16 + $0x48] sm:$0xff]  ;;  %v418_v17 = vld [vmem:[%s1266_s16 + $0x40] sm:$0xff]  ;;  %v417_v19 = vld [vmem:[%s1266_s16 + $0x38] sm:$0xff] }
  0x20   : > { %v535_v20 = vld [vmem:[%s1271_s19 + $0x30] sm:$0xff]  ;;  %v534_v22 = vld [vmem:[%s1271_s19 + $0x28] sm:$0xff]  ;;  %v533_v24 = vld [vmem:[%s1271_s19 + $0x20] sm:$0xff] }
  0x21   : > { %v416_v21 = vld [vmem:[%s1266_s16 + $0x30] sm:$0xff]  ;;  %v415_v23 = vld [vmem:[%s1266_s16 + $0x28] sm:$0xff]  ;;  %v414_v25 = vld [vmem:[%s1266_s16 + $0x20] sm:$0xff] }
  0x22   : > { %v532_v26 = vld [vmem:[%s1271_s19 + $0x18] sm:$0xff]  ;;  %v531_v28 = vld [vmem:[%s1271_s19 + $0x10] sm:$0xff]  ;;  %v530_v30 = vld [vmem:[%s1271_s19 + $0x8] sm:$0xff] }
  0x23   : > { %612 = vperm.xlu1 %1048, %v542_v5   ;;  %494 = vperm.xlu0 %1047, %v423_v6   ;;  %v413_v27 = vld [vmem:[%s1266_s16 + $0x18] sm:$0xff]  ;;  %v412_v29 = vld [vmem:[%s1266_s16 + $0x10] sm:$0xff]  ;;  %v411_v31 = vld [vmem:[%s1266_s16 + $0x8] sm:$0xff] }
  0x24   : > { %v529_v32 = vld [vmem:[%s1271_s19] sm:$0xff] }
  0x25   : > { %v410_v33 = vld [vmem:[%s1266_s16] sm:$0xff]  ;;  %s929_s16 = sshll.u32 %s1260_s12, 2  ;;  %s767_s12 = scalar_lea.sflag [#allocation5], %s362_s14 }
  0x26   : > { %s404_s19 = scalar_lea.vmem %s1396_s4, %s929_s16 }
  0x27   : > { %607 = vperm.xlu1 %1048, %v541_v7   ;;  %489 = vperm.xlu0 %1047, %v422_v8  }
  0x2b   : > { %602 = vperm.xlu1 %1048, %v540_v9   ;;  %484 = vperm.xlu0 %1047, %v421_v10  }
  0x2f   : > { %597 = vperm.xlu1 %1048, %v539_v11   ;;  %479 = vperm.xlu0 %1047, %v420_v12  }
  0x33   : > { %592 = vperm.xlu1 %1048, %v538_v14   ;;  %474 = vperm.xlu0 %1047, %v419_v15  }
  0x37   : > { %587 = vperm.xlu1 %1048, %v537_v16   ;;  %469 = vperm.xlu0 %1047, %v418_v17  }
  0x3b   : > { %582 = vperm.xlu1 %1048, %v536_v18   ;;  %464 = vperm.xlu0 %1047, %v417_v19  }
  0x3f   : > { %577 = vperm.xlu1 %1048, %v535_v20   ;;  %459 = vperm.xlu0 %1047, %v416_v21  }
  0x43   : > { %572 = vperm.xlu1 %1048, %v534_v22   ;;  %454 = vperm.xlu0 %1047, %v415_v23  }
  0x47   : > { %567 = vperm.xlu1 %1048, %v533_v24   ;;  %449 = vperm.xlu0 %1047, %v414_v25  }
  0x4b   : > { %562 = vperm.xlu1 %1048, %v532_v26   ;;  %444 = vperm.xlu0 %1047, %v413_v27  }
  0x4f   : > { %557 = vperm.xlu1 %1048, %v531_v28   ;;  %439 = vperm.xlu0 %1047, %v412_v29  }
  0x53   : > { %552 = vperm.xlu1 %1048, %v530_v30   ;;  %434 = vperm.xlu0 %1047, %v411_v31  }
  0x57   : > { %547 = vperm.xlu1 %1048, %v529_v32   ;;  %429 = vperm.xlu0 %1047, %v410_v33  }
  0x96   : > { %v505_v35 = vpop.permute.xlu0 %504  ;;  %v500_v36 = vpop.permute.xlu1 %499 }
  0x97   : > { %v527_v37 = vmul.f32 %v1312_v34, %v500_v36  ;;  %v528_v38 = vmul.f32 %v1312_v34, %v505_v35 }
  0x9a   : > { %v623_v39 = vpop.permute.xlu0 %622  ;;  %v618_v40 = vpop.permute.xlu1 %617 }
  0x9b   : > { %v640_v41 = vsub.f32 %v528_v38, %v623_v39  ;;  %v639_v42 = vsub.f32 %v527_v37, %v618_v40 }
  0x9d   : > { %v671_v43 = vmul.f32 1.442695, %v640_v41  ;;  %v669_v46 = vmul.f32 1.442695, %v639_v42 }
  0x9e   : > { %v613_v44 = vpop.permute.xlu1 %612  ;;  %v495_v45 = vpop.permute.xlu0 %494 }
  0x9f   : > { %1049 = vpow2.f32 %v671_v43  ;;  %v526_v47 = vmul.f32 %v1312_v34, %v495_v45 }
  0xa0   : > { %1051 = vpow2.f32 %v669_v46 }
  0xa1   : > { %v638_v48 = vsub.f32 %v526_v47, %v613_v44 }
  0xa2   : > { %v608_v49 = vpop.permute.xlu1 %607  ;;  %v490_v50 = vpop.permute.xlu0 %489 }
  0xa3   : > { %v667_v51 = vmul.f32 1.442695, %v638_v48  ;;  %v525_v52 = vmul.f32 %v1312_v34, %v490_v50 }
  0xa5   : > { %v637_v53 = vsub.f32 %v525_v52, %v608_v49  ;;  %1053 = vpow2.f32 %v667_v51 }
  0xa6   : > { %v603_v54 = vpop.permute.xlu1 %602  ;;  %v485_v55 = vpop.permute.xlu0 %484 }
  0xa7   : > { %v665_v56 = vmul.f32 1.442695, %v637_v53  ;;  %v524_v57 = vmul.f32 %v1312_v34, %v485_v55 }
  0xa9   : > { %v636_v58 = vsub.f32 %v524_v57, %v603_v54  ;;  %1055 = vpow2.f32 %v665_v56 }
  0xaa   : > { %v598_v59 = vpop.permute.xlu1 %597  ;;  %v480_v60 = vpop.permute.xlu0 %479 }
  0xab   : > { %v663_v61 = vmul.f32 1.442695, %v636_v58  ;;  %v523_v62 = vmul.f32 %v1312_v34, %v480_v60 }
  0xac   : > { %v1050_v63 = vpop.eup %1049 }
  0xad   : > { %v635_v0 = vsub.f32 %v523_v62, %v598_v59  ;;  %955 = vmatpush3.xpose.msra.mxu0 %v1050_v63  ;;  %1057 = vpow2.f32 %v663_v61  ;;  %v1052_v5 = vpop.eup %1051 }
  0xae   : > { %v593_v1 = vpop.permute.xlu1 %592  ;;  %v475_v2 = vpop.permute.xlu0 %474  ;;  %956 = vmatprep.subr.mxu0 %v1162_v13 }
  0xaf   : > { %v661_v3 = vmul.f32 1.442695, %v635_v0  ;;  %v522_v4 = vmul.f32 %v1312_v34, %v475_v2 }
  0xb1   : > { %v634_v6 = vsub.f32 %v522_v4, %v593_v1  ;;  %957 = vmatpush3.xpose.msra.mxu0 %v1052_v5  ;;  %1059 = vpow2.f32 %v661_v3  ;;  %v673_v4 = vld [vmem:[%s397_s9] sm:$0x1f]  ;;  %s1083_s9 = scalar_lea.vmem %s782_s22, 64 }
  0xb2   : > { %v588_v7 = vpop.permute.xlu1 %587  ;;  %v470_v8 = vpop.permute.xlu0 %469  ;;  %958 = vmatprep.subr.mxu0 %v1162_v13  ;;  %v674_v5 = vld [vmem:[#allocation2] sm:$0x1f]  ;;  %p1084_p12 = scmp.ne.s32.totalorder %s782_s22, %s1083_s9 }
  0xb3   : > { %v659_v9 = vmul.f32 1.442695, %v634_v6  ;;  %v521_v10 = vmul.f32 %v1312_v34, %v470_v8  ;;  %v1054_v11 = vpop.eup %1053 }
  0xb4   : > { %p1085_p13 = pnand %p1084_p12, %p1243_p4 }
  0xb5   : > { %v633_v12 = vsub.f32 %v521_v10, %v588_v7  ;;  %959 = vmatpush3.xpose.msra.mxu0 %v1054_v11  ;;  %1061 = vpow2.f32 %v659_v9  ;;  %v755_v10 = vlaneseq }
  0xb6   : > { %v583_v14 = vpop.permute.xlu1 %582  ;;  %v465_v15 = vpop.permute.xlu0 %464  ;;  %960 = vmatprep.subr.mxu0 %v1162_v13  ;;  %p1086_p0 = pneg %p1085_p13 }
  0xb7   : > { %v657_v16 = vmul.f32 1.442695, %v633_v12  ;;  %v520_v17 = vmul.f32 %v1312_v34, %v465_v15  ;;  %v1056_v18 = vpop.eup %1055 }
  0xb9   : > { %v632_v19 = vsub.f32 %v520_v17, %v583_v14  ;;  %961 = vmatpush3.xpose.msra.mxu0 %v1056_v18  ;;  %1063 = vpow2.f32 %v657_v16  ;;  %v762_v18 = vstv %s761_s13  ;;  %s1164_s13 = smov [#allocation4]  }
  0xba   : > { %v578_v20 = vpop.permute.xlu1 %577  ;;  %v460_v21 = vpop.permute.xlu0 %459  ;;  %962 = vmatprep.subr.mxu0 %v1162_v13  ;;  %s1087_s16 = sshll.u32 %s1164_s13, 4  ;;  %s1088_s16 = int_to_ptr.vmem [resolvable:$false] %s1087_s16 }
  0xbb   : > { %v655_v22 = vmul.f32 1.442695, %v632_v19  ;;  %v519_v23 = vmul.f32 %v1312_v34, %v460_v21  ;;  %v1058_v24 = vpop.eup %1057  ;;  %s1089_s26 = scalar_lea.vmem %s1088_s16, 128  ;;  %p1090_p1 = scmp.lt.s32.totalorder %s782_s22, %s1088_s16 }
  0xbc   : > { %p1091_p2 = scmp.lt.s32.totalorder %s1089_s26, %s1083_s9 }
  0xbd   : > { %v631_v25 = vsub.f32 %v519_v23, %v578_v20  ;;  %963 = vmatpush3.xpose.msra.mxu0 %v1058_v24  ;;  %1065 = vpow2.f32 %v655_v22  ;;  %v760_v20 = vld [vmem:[%s404_s19] sm:$0xf] }
  0xbe   : > { %v573_v26 = vpop.permute.xlu1 %572  ;;  %v455_v27 = vpop.permute.xlu0 %454  ;;  %964 = vmatprep.subr.mxu0 %v1162_v13  ;;  %p1092_p3 = por %p1091_p2, %p1090_p1 }
  0xbf   : > { %v653_v28 = vmul.f32 1.442695, %v631_v25  ;;  %v518_v29 = vmul.f32 %v1312_v34, %v455_v27  ;;  %v1060_v30 = vpop.eup %1059 }
  0xc0   : > { %p1093_p5 = pnand %p1092_p3, %p1086_p0 }
  0xc1   : > { %v630_v31 = vsub.f32 %v518_v29, %v573_v26  ;;  %965 = vmatpush3.xpose.msra.mxu0 %v1060_v30  ;;  %1067 = vpow2.f32 %v653_v28 }
  0xc2   : > { %v568_v32 = vpop.permute.xlu1 %567  ;;  %v450_v33 = vpop.permute.xlu0 %449  ;;  %966 = vmatprep.subr.mxu0 %v1162_v13 }
  0xc3   : > { %v651_v35 = vmul.f32 1.442695, %v630_v31  ;;  %v517_v36 = vmul.f32 %v1312_v34, %v450_v33  ;;  %v1062_v37 = vpop.eup %1061 }
  0xc5   : > { %v629_v38 = vsub.f32 %v517_v36, %v568_v32  ;;  %967 = vmatpush3.xpose.msra.mxu0 %v1062_v37  ;;  %1069 = vpow2.f32 %v651_v35 }
  0xc6   : > { %v563_v39 = vpop.permute.xlu1 %562  ;;  %v445_v40 = vpop.permute.xlu0 %444  ;;  %968 = vmatprep.subr.mxu0 %v1162_v13 }
  0xc7   : > { %v649_v41 = vmul.f32 1.442695, %v629_v38  ;;  %v516_v42 = vmul.f32 %v1312_v34, %v445_v40  ;;  %v1064_v43 = vpop.eup %1063 }
  0xc9   : > { %v628_v44 = vsub.f32 %v516_v42, %v563_v39  ;;  %969 = vmatpush3.xpose.msra.mxu0 %v1064_v43  ;;  %1071 = vpow2.f32 %v649_v41 }
  0xca   : > { %v558_v45 = vpop.permute.xlu1 %557  ;;  %v440_v46 = vpop.permute.xlu0 %439  ;;  %970 = vmatprep.subr.mxu0 %v1162_v13 }
  0xcb   : > { %v647_v47 = vmul.f32 1.442695, %v628_v44  ;;  %v515_v48 = vmul.f32 %v1312_v34, %v440_v46  ;;  %v1066_v49 = vpop.eup %1065 }
  0xcd   : > { %v627_v50 = vsub.f32 %v515_v48, %v558_v45  ;;  %971 = vmatpush3.xpose.msra.mxu0 %v1066_v49  ;;  %1073 = vpow2.f32 %v647_v47 }
  0xce   : > { %v553_v51 = vpop.permute.xlu1 %552  ;;  %v435_v52 = vpop.permute.xlu0 %434  ;;  %972 = vmatprep.subr.mxu0 %v1162_v13 }
  0xcf   : > { %v645_v53 = vmul.f32 1.442695, %v627_v50  ;;  %v514_v54 = vmul.f32 %v1312_v34, %v435_v52  ;;  %v1068_v55 = vpop.eup %1067 }
  0xd1   : > { %v626_v56 = vsub.f32 %v514_v54, %v553_v51  ;;  %973 = vmatpush3.xpose.msra.mxu0 %v1068_v55  ;;  %1075 = vpow2.f32 %v645_v53 }
  0xd2   : > { %v430_v57 = vpop.permute.xlu0 %429  ;;  %974 = vmatprep.subr.mxu0 %v1162_v13  ;;  %v1070_v60 = vpop.eup %1069 }
  0xd3   : > { %v643_v58 = vmul.f32 1.442695, %v626_v56  ;;  %v513_v59 = vmul.f32 %v1312_v34, %v430_v57  ;;  %v548_v61 = vpop.permute.xlu1 %547 }
  0xd5   : > { %v625_v62 = vsub.f32 %v513_v59, %v548_v61  ;;  %975 = vmatpush3.xpose.msra.mxu0 %v1070_v60  ;;  %1077 = vpow2.f32 %v643_v58 }
  0xd6   : > { %976 = vmatprep.subr.mxu0 %v1162_v13  ;;  %v1072_v0 = vpop.eup %1071 }
  0xd7   : > { %v641_v63 = vmul.f32 1.442695, %v625_v62 }
  0xd9   : > { %977 = vmatpush3.xpose.msra.mxu0 %v1072_v0  ;;  %1079 = vpow2.f32 %v641_v63 }
  0xda   : > { %978 = vmatprep.subr.mxu0 %v1162_v13  ;;  %v1074_v1 = vpop.eup %1073 }
  0xdd   : > { %979 = vmatpush3.xpose.msra.mxu0 %v1074_v1 }
  0xde   : > { %980 = vmatprep.subr.mxu0 %v1162_v13  ;;  %v1076_v2 = vpop.eup %1075 }
  0xe1   : > { %981 = vmatpush3.xpose.msra.mxu0 %v1076_v2 }
  0xe2   : > { %982 = vmatprep.subr.mxu0 %v1162_v13  ;;  %v1078_v34 = vpop.eup %1077 }
  0xe5   : > { %983 = vmatpush3.xpose.msra.mxu0 %v1078_v34 }
  0xe6   : > { %984 = vmatprep.subr.mxu0 %v1162_v13  ;;  %v1080_v3 = vpop.eup %1079  ;;  %v756_v13 = vshrl.u32 %v755_v10, 7 }
  0xe8   : > { %v757_v15 = vsub.s32 4, %v756_v13 }
  0xe9   : > { %985 = vmatpush3.xpose.msra.mxu0 %v1080_v3 }
  0xec   : > { %987 = vmatmul.mubr.f32.vlgmr.msra.gmra.mxu0 %v673_v4 }
 0x1ac   : > { %v741_v6 = vpop.f32.mrf.mxu0 }
 0x1ad   : > { %v745_v7 = vadd.f32 %v741_v6, %v674_v5 }
 0x1ae   : > { %v988_v8 = vpop.f32.mrf.mxu0 }
 0x1af   : > { %746 = vst [vmem:[#allocation2] sm:$0x1f] %v745_v7 }
 0x1b6   : > { %v750_v9 = vld [vmem:[#allocation2] sm:$0x1f] }
 0x1b7   : > { %1081 = vrcp.f32 %v750_v9 }
 0x1c4   : > { %v1082_v11 = vpop.eup %1081 }
 0x1c5   : > { %v752_v12 = vmul.f32 %v1082_v11, %v750_v9 }
 0x1c7   : > { %v753_v14 = vsub.f32 2.0, %v752_v12 }
 0x1c9   : > { %v754_v16 = vmul.f32 %v1082_v11, %v753_v14 }
 0x1cb   : > { %v758_v17 = vrot.slane %v754_v16, %v757_v15 }
 0x1cd   : > { %v759_v19 = vmul.f32 %v758_v17, %v750_v9 }
 0x1cf   : > { %v763_v21 = vmul.f32 %v762_v18, %v759_v19 }
 0x1d1   : > { %v764_v22 = vadd.f32 %v763_v21, %v760_v20 }
 0x1d3   : > { %765 = vst [vmem:[%s364_s21] sm:$0xf] %v764_v22 }
 0x1d4   : > { %1096 = shalt.err (!%p1093_p5)
}
 0x1d5   : > { %s1097_s15 = scalar_lea.hbm %s779_s7, 64  ;;  %s1101_s18 = scalar_lea.hbm %s1398_s6, 128 }
 0x1d6   : > { %p1098_p6 = scmp.ne.s32.totalorder %s779_s7, %s1097_s15  ;;  %p1102_p10 = scmp.lt.s32.totalorder %s779_s7, %s1398_s6 }
 0x1d7   : > { %p1103_p11 = scmp.lt.s32.totalorder %s1101_s18, %s1097_s15 }
 0x1d8   : > { %p1099_p7 = pnand %p1098_p6, %p1243_p4 }
 0x1d9   : > { %p1104_p12 = por %p1103_p11, %p1102_p10 }
 0x1da   : > { %p1100_p9 = pneg %p1099_p7 }
 0x1dc   : > { %p1105_p13 = pnand %p1104_p12, %p1100_p9 }
 0x1de   : > { %1108 = shalt.err (!%p1105_p13)
}
 0x1df   : > { %989 = dma.vmem_to_hbm [thread:$0]  (%p1243_p4), %s782_s22, 64, %s779_s7, %s767_s12  }
 0x1e0 PF: > { %p995_p0 = scmp.ge.s32.totalorder %s1159_s28, 2  ;;  %s793_s21 = sand.u32 1, %s1139_s23  }
 0x1e1   : > { %s794_s5 = scalar_lea.sflag [#allocation5], %s793_s21 }
 0x1e2   : > { %p992_p1 = pnand %p995_p0, %p1250_p8 }
 0x1e4   : > { %p993_p2 = pneg %p992_p1 }
 0x1e6   : > { %1134 = dma.done.wait (%p993_p2), %s794_s5, 64  }
 0x1e7   : > { %1136 = vsyncadd (%p993_p2), %s794_s5, 4294967232  ;;  %s20_s28 = sadd.s32 1, %s1159_s28   ;;  %s1401_s23 = smov %s1143_s24 }
 0x1e8   : > { %p17_p3 = scmp.ge.s32.totalorder %s20_s28, 4   ;;  %s1402_s24 = smov %s1147_s25 }
 0x1e9   : > { %s1403_s25 = smov %s1256_s11  ;;  %s1404_s26 = smov %s1155_s27 }
 0x1ea   : > { %s1405_s27 = smov %s1407_s30  ;;  %19 = sbr.rel (!%p17_p3) target bundleno = 6 (0x6), region = 99 }
 0x1ef   :  { %799 = vsyncpa [#allocation5], 1 }
 0x1f0   :  { %801 = vsyncpa [#allocation5 + $0x1], 1 }

</bundles_post_ra>
